<compile_context>
chip_gen: v5e
topology: v5e:2x2
jax: 0.10.0
libtpu: 0.0.40
codegen_flags: <defaults>
</compile_context>

<pallas_src>
import functools
import math

import jax
import jax.numpy as jnp
from jax.experimental import pallas as pl
from jax.experimental.pallas import tpu as pltpu

_LANE = 128
_MAX_FLAT_LANES = 4096
_PE_RESIDENT_BYTES = 8 * 1024 * 1024  # keep pe fully resident in VMEM below this size


def make_positional_encoding(d_model: int, max_len: int = 5000) -> jnp.ndarray:
    """Build the pe buffer exactly as the PyTorch __init__ does. Shape (1, max_len, d_model)."""
    position = jnp.arange(0, max_len, dtype=jnp.float32)[:, None]            # (max_len, 1)
    div_term = jnp.exp(
        jnp.arange(0, d_model, 2, dtype=jnp.float32) * (-math.log(10000.0) / d_model)
    )
    angles = position * div_term                                             # (max_len, ceil(d/2))
    pe = jnp.zeros((max_len, d_model), dtype=jnp.float32)
    pe = pe.at[:, 0::2].set(jnp.sin(angles))
    pe = pe.at[:, 1::2].set(jnp.cos(angles)[:, : d_model // 2])
    return pe[None]                                                          # (1, max_len, d_model)


def _add_pe_tiled_kernel(x_ref, pe_ref, o_ref):
    # Same-shape (tP, C) blocks: pure vld / vadd / vst, no broadcast, no relayout.
    o_ref[...] = (x_ref[...] + pe_ref[...]).astype(o_ref.dtype)


def _add_pe_resident_kernel(x_ref, pe_ref, o_ref, *, tile_rows):
    # pe_ref holds the whole (row-padded) (P_pad, C) addend resident in VMEM; pick this
    # block's rows with a sublane-aligned dynamic slice (tile_rows is a sublane multiple).
    row = pl.multiple_of(pl.program_id(1) * tile_rows, tile_rows)
    o_ref[...] = (x_ref[...] + pe_ref[pl.ds(row, tile_rows), :]).astype(o_ref.dtype)


def _vmem_tuning():
    """(target_block_bytes, vmem_limit_bytes) gated on the chip's physical VMEM."""
    try:
        cap = int(pltpu.get_tpu_info().vmem_capacity_bytes)
    except Exception:
        cap = 64 * 1024 * 1024  # conservative fallback: v7x per-TC VMEM
    if cap >= 96 * 1024 * 1024:                     # v5e / v6e: 128 MiB VMEM
        return 8 * 1024 * 1024, 56 * 1024 * 1024
    return 4 * 1024 * 1024, 48 * 1024 * 1024        # v7x: 64 MiB VMEM


def positional_encoding_forward(
    x: jnp.ndarray,
    pe: jnp.ndarray,
    *,
    _target_block_bytes: int | None = None,     # test hooks (tiny shapes can exercise
    _pe_resident_bytes: int | None = None,      # every code path)
) -> jnp.ndarray:
    """x: (B, S, D); pe: (1, max_len, D). Returns x + pe[:, :S] (in x.dtype)."""
    B, S, D = x.shape
    _, max_len, Dp = pe.shape
    assert Dp == D and S <= max_len

    itemsize = jnp.dtype(x.dtype).itemsize
    sublane = max(8, 32 // itemsize)            # native sublane tile: 8 f32 / 16 bf16 / 32 i8
    target_block_bytes, vmem_limit = _vmem_tuning()
    if _target_block_bytes is not None:
        target_block_bytes = _target_block_bytes
    pe_resident_cap = _PE_RESIDENT_BYTES if _pe_resident_bytes is None else _pe_resident_bytes

    # ---- addend: slice once, cast once to x.dtype (removes in-kernel converts,
    #      halves pe HBM bytes for bf16 inputs) --------------------------------------------
    pe_slab = pe[0, :S, :].astype(x.dtype)      # (S, D)

    # ---- lane-dense (P rows x C lanes) view of each (S, D) slab ---------------------------
    pad_d = 0
    if D % _LANE != 0 and (S * D) % _LANE != 0:
        # Pad D up to a lane multiple so stores are full-width vst (no masked vst.msk);
        # padding is stripped from the output after the call.
        pad_d = (-D) % _LANE
        x = jnp.pad(x, ((0, 0), (0, 0), (0, pad_d)))
        pe_slab = jnp.pad(pe_slab, ((0, 0), (0, pad_d)))
    D_eff = D + pad_d
    n = S * D_eff

    if D_eff % _LANE == 0:
        # Natural layout is already lane-dense: no data movement for x.
        C, P = D_eff, S
        x3 = x
    else:
        # Narrow/unaligned D with S*D a lane multiple (e.g. D=32): flatten each slab
        # row-major into rows of C lanes (free reshape), C a multiple of 128 dividing S*D.
        C = _LANE
        while n % (2 * C) == 0 and 2 * C <= _MAX_FLAT_LANES:
            C *= 2
        P = n // C
        x3 = x.reshape(B, P, C)
    pe2d = pe_slab.reshape(P, C)

    # ---- row tile: multiple of the native sublane tile, sized against the VMEM budget ----
    row_bytes = C * itemsize
    budget_rows = max(1, (vmem_limit - 8 * 1024 * 1024) // (6 * row_bytes))
    rows_cap = min(target_block_bytes // row_bytes, budget_rows)
    rows_cap = max(sublane, (rows_cap // sublane) * sublane)
    # TODO(synk): absurdly wide rows (sublane*C*itemsize*6 > vmem_limit) would also need a
    # lane tile; not reachable for realistic d_model.
    tP = P if P <= rows_cap else rows_cap
    num_p = pl.cdiv(P, tP)

    pe_pad_rows = num_p * tP
    pe_res_bytes = pe_pad_rows * row_bytes
    use_resident = (
        pe_res_bytes <= pe_resident_cap
        and 4 * tP * row_bytes + 2 * pe_res_bytes <= vmem_limit - 4 * 1024 * 1024
    )

    if num_p == 1:
        # Whole slab is one block; the constant pe index_map means pe is DMA'd exactly once
        # regardless of B. Batch stays the leading parallel axis (v7x megacore shards it).
        kernel = _add_pe_tiled_kernel
        grid = (B, 1)
        in_specs = [
            pl.BlockSpec((None, tP, C), lambda b, p: (b, p, 0)),
            pl.BlockSpec((P, C), lambda b, p: (0, 0)),
        ]
        out_spec = pl.BlockSpec((None, tP, C), lambda b, p: (b, p, 0))
    elif use_resident:
        # Small addend, several row tiles: keep the whole (row-padded) pe resident in VMEM
        # (single DMA, constant index_map) and slice it per row tile inside the kernel.
        if pe_pad_rows != P:
            pe2d = jnp.pad(pe2d, ((0, pe_pad_rows - P), (0, 0)))
        kernel = functools.partial(_add_pe_resident_kernel, tile_rows=tP)
        grid = (B, num_p)
        in_specs = [
            pl.BlockSpec((None, tP, C), lambda b, p: (b, p, 0)),
            pl.BlockSpec((pe_pad_rows, C), lambda b, p: (0, 0)),
        ]
        out_spec = pl.BlockSpec((None, tP, C), lambda b, p: (b, p, 0))
    else:
        # Large addend: tile pe in rows and make batch the fastest-varying grid axis so the
        # pe block index is unchanged between consecutive steps -> Pallas skips its DMA and
        # pe streams num_p times instead of B*num_p. num_p >= 2 here (the slab is bigger
        # than one block), so the leading parallel axis still feeds both v7x TensorCores.
        kernel = _add_pe_tiled_kernel
        grid = (num_p, B)
        in_specs = [
            pl.BlockSpec((None, tP, C), lambda p, b: (b, p, 0)),
            pl.BlockSpec((tP, C), lambda p, b: (p, 0)),
        ]
        out_spec = pl.BlockSpec((None, tP, C), lambda p, b: (b, p, 0))

    out = pl.pallas_call(
        kernel,
        out_shape=jax.ShapeDtypeStruct((B, P, C), x.dtype),
        grid_spec=pl.GridSpec(grid=grid, in_specs=in_specs, out_specs=out_spec),
        compiler_params=pltpu.CompilerParams(
            dimension_semantics=("parallel", "parallel"),
            vmem_limit_bytes=vmem_limit,
        ),
        # TODO(synk): optionally add input_output_aliases={0: 0} with a donated x so the
        # output reuses x's HBM buffer inside larger graphs (no bandwidth change).
    )(x3, pe2d)

    out = out.reshape(B, S, D_eff)
    if pad_d:
        out = out[:, :, :D]
    return out


if __name__ == "__main__":
    key = jax.random.PRNGKey(0)

    # Case 1: narrow D (lane-dense flattening path; whole slab is one block).
    B, S, D, max_len = 2, 8, 32, 64
    x = jax.random.normal(key, (B, S, D), dtype=jnp.float32)
    pe = make_positional_encoding(D, max_len=max_len)
    out = jax.block_until_ready(positional_encoding_forward(x, pe))
    ref = x + pe[:, :S]
    assert out.shape == (B, S, D)
    assert jnp.allclose(out, ref, atol=1e-6), "mismatch vs reference (D=32)"

    # Case 2: D multiple of 128 (natural-layout path).
    B2, S2, D2, max_len2 = 2, 16, 128, 32
    x2 = jax.random.normal(jax.random.PRNGKey(1), (B2, S2, D2), dtype=jnp.float32)
    pe2 = make_positional_encoding(D2, max_len=max_len2)
    out2 = jax.block_until_ready(positional_encoding_forward(x2, pe2))
    ref2 = x2 + pe2[:, :S2]
    assert jnp.allclose(out2, ref2, atol=1e-6), "mismatch vs reference (D=128)"

    # Case 3: D and S*D not lane multiples -> zero-pad D to 128, slice the output back.
    B3, S3, D3, max_len3 = 2, 7, 20, 16
    x3 = jax.random.normal(jax.random.PRNGKey(2), (B3, S3, D3), dtype=jnp.float32)
    pe3 = make_positional_encoding(D3, max_len=max_len3)
    out3 = jax.block_until_ready(positional_encoding_forward(x3, pe3))
    ref3 = x3 + pe3[:, :S3]
    assert out3.shape == (B3, S3, D3)
    assert jnp.allclose(out3, ref3, atol=1e-6), "mismatch vs reference (padded D=20)"

    # Case 4: force multiple row tiles with a tiny block -> resident-pe dynamic-slice path.
    B4, S4, D4 = 3, 32, 128
    x4 = jax.random.normal(jax.random.PRNGKey(3), (B4, S4, D4), dtype=jnp.float32)
    pe4 = make_positional_encoding(D4, max_len=64)
    out4 = jax.block_until_ready(
        positional_encoding_forward(x4, pe4, _target_block_bytes=8 * 128 * 4)
    )
    ref4 = x4 + pe4[:, :S4]
    assert jnp.allclose(out4, ref4, atol=1e-6), "mismatch vs reference (resident path)"

    # Case 5: same shapes, resident cap forced to 0 -> row-tiled pe + (num_p, B) grid path.
    out5 = jax.block_until_ready(
        positional_encoding_forward(
            x4, pe4, _target_block_bytes=8 * 128 * 4, _pe_resident_bytes=0
        )
    )
    assert jnp.allclose(out5, ref4, atol=1e-6), "mismatch vs reference (tiled-pe path)"

    print("KERNEL_OK")
</pallas_src>

<mosaic_0001>
module attributes {stable_mosaic.version = 11 : i64} {
  func.func @_add_pe_tiled_kernel(%arg0: i32, %arg1: i32, %arg2: memref<1x1x256xf32, #tpu.memory_space<vmem>>, %arg3: memref<1x256xf32, #tpu.memory_space<vmem>>, %arg4: memref<1x1x256xf32, #tpu.memory_space<vmem>>) attributes {dimension_semantics = [#tpu.dimension_semantics<parallel>, #tpu.dimension_semantics<parallel>], iteration_bounds = array<i64: 2, 1>, scalar_prefetch = 0 : i64, scratch_operands = 0 : i64, tpu.core_type = #tpu.core_type<tc>, window_params = [{transform_indices = @transform_0, window_bounds = array<i64: 1, 1, 256>}, {pipeline_mode = #tpu.pipeline_mode<synchronous>, transform_indices = @transform_1, window_bounds = array<i64: 1, 256>}, {transform_indices = @transform_2, window_bounds = array<i64: 1, 1, 256>}]} {
    %c0 = arith.constant 0 : index
    %c0_0 = arith.constant 0 : index
    %c0_1 = arith.constant 0 : index
    %0 = vector.load %arg2[%c0, %c0_0, %c0_1] : memref<1x1x256xf32, #tpu.memory_space<vmem>>, vector<1x1x256xf32>
    %1 = vector.shape_cast %0 : vector<1x1x256xf32> to vector<1x256xf32>
    %c0_2 = arith.constant 0 : index
    %c0_3 = arith.constant 0 : index
    %2 = vector.load %arg3[%c0_2, %c0_3] : memref<1x256xf32, #tpu.memory_space<vmem>>, vector<1x256xf32>
    %3 = arith.addf %1, %2 : vector<1x256xf32>
    %c0_4 = arith.constant 0 : index
    %c0_5 = arith.constant 0 : index
    %c0_6 = arith.constant 0 : index
    %4 = vector.load %arg4[%c0_4, %c0_5, %c0_6] : memref<1x1x256xf32, #tpu.memory_space<vmem>>, vector<1x1x256xf32>
    %5 = vector.shape_cast %4 : vector<1x1x256xf32> to vector<1x256xf32>
    %6 = vector.shape_cast %3 : vector<1x256xf32> to vector<1x1x256xf32>
    tpu.vector_store %arg4[%c0_4, %c0_5, %c0_6], %6 {strides = array<i32>} : memref<1x1x256xf32, #tpu.memory_space<vmem>>, vector<1x1x256xf32>,
    return
  }
  func.func @transform_0(%arg0: i32, %arg1: i32) -> (i32, i32, i32) {
    %c0_i32 = arith.constant 0 : i32
    %c0_i32_0 = arith.constant 0 : i32
    return %arg0, %arg1, %c0_i32 : i32, i32, i32
  }
  func.func @transform_1(%arg0: i32, %arg1: i32) -> (i32, i32) {
    %c0_i32 = arith.constant 0 : i32
    %c0_i32_0 = arith.constant 0 : i32
    %c0_i32_1 = arith.constant 0 : i32
    return %c0_i32, %c0_i32_0 : i32, i32
  }
  func.func @transform_2(%arg0: i32, %arg1: i32) -> (i32, i32, i32) {
    %c0_i32 = arith.constant 0 : i32
    %c0_i32_0 = arith.constant 0 : i32
    return %arg0, %arg1, %c0_i32 : i32, i32, i32
  }
}

</mosaic_0001>

<bundles_post_ra>
// kernel: tpu_custom_call.1
= control target key start
LH: loop header
LB: loop body
LE: loop exit
PB: predicated region body
PF: predicated region fallthrough
CT: control target
= control target key end

     0   :  { %7 = vsyncpa [#allocation3], 0  ;;  %s713_s0 = inlined_call_operand.hbm [shape: f32[2,1,256], index: 0, kind: input, shape index: {}]   ;;  %s714_s1 = inlined_call_operand.hbm [shape: f32[1,256], index: 1, kind: input, shape index: {}]   ;;  %s715_s2 = inlined_call_operand.hbm [shape: f32[2,1,256], index: 2, kind: output, shape index: {}]  }
   0x1   :  { %9 = vsyncpa [#allocation3 + $0x1], 0 }
   0x2   :  { %10 = vsyncpa [#allocation6], 0 }
   0x3   :  { %11 = vsyncpa [#allocation4], 0 }
   0x4   :  { %13 = vsyncpa [#allocation4 + $0x1], 0  ;;  %s564_s9 = smov 0   ;;  %s566_s10 = smov 0  }
   0x5   :  { %s568_s11 = smov 0   ;;  %s570_s12 = smov 0  }
   0x6   :  { %s572_s13 = smov 0   ;;  %s574_s14 = smov 0  }
   0x7 LB: > { %s312_s15 = sadd.s32 4294967295, %s546_s14   ;;  %s313_s16 = sadd.s32 4294967294, %s546_s14   ;;  %s546_s14 = sphi %s574_s14, %s19_s14   ;;  %s542_s13 = sphi %s572_s13, %s727_s13   ;;  %s538_s12 = sphi %s570_s12, %s726_s12   ;;  %s534_s11 = sphi %s568_s11, %s725_s11   ;;  %s530_s10 = sphi %s566_s10, %s724_s10   ;;  %s526_s9 = sphi %s564_s9, %s723_s9  }
   0x8   : > { %p53_p0 = scmp.ne.s32.totalorder %s530_s10, %s526_s9  ;;  %p598_p1 = scmp.eq.s32.totalorder %s312_s15, 0 }
   0x9   : > { %p602_p2 = scmp.eq.s32.totalorder %s312_s15, 1  ;;  %p106_p3 = scmp.eq.s32.totalorder %s313_s16, 1 }
   0xa   : > { %p608_p4 = por %p598_p1, %p53_p0  ;;  %p314_p5 = scmp.ge.s32.totalorder %s546_s14, 1 }
   0xb   : > { %p613_p6 = por %p106_p3, %p53_p0  ;;  %p113_p7 = scmp.lt.s32.totalorder %s546_s14, 3 }
   0xc   : > { %s125_s23 = sshll.u32 %s714_s1, 4  ;;  %p316_p9 = scmp.ge.s32.totalorder %s546_s14, 2  ;;  %s126_s23 = int_to_ptr.hbm [resolvable:$true] %s125_s23 }
   0xd   : > { %p621_p8 = pnand %p314_p5, %p113_p7  ;;  %s548_s25 = smov [#allocation5]  }
   0xe   : > { %s127_s26 = sshll.u32 %s548_s25, 4  ;;  %s31_s27 = sadd.s32 1, %s542_s13  ;;  %s128_s26 = int_to_ptr.vmem [resolvable:$true] %s127_s26 }
   0xf   : > { %p335_p10 = pneg %p621_p8  ;;  %p33_p12 = scmp.ge.s32.totalorder %s31_s27, 2 }
  0x10   : > { %s40_s28 = sadd.s32 1, %s534_s11  ;;  %p47_p13 = scmp.ne.s32.totalorder %s534_s11, %s530_s10 }
  0x11   : > { %p336_p11 = pnand %p335_p10, %p598_p1  ;;  %p48_p0 = scmp.eq.s32.totalorder %s546_s14, 0 }
  0x12   : > { %s729_s27 = smov (%p33_p12, %s31_s27), 0  ;;  %p643_p5 = por %p602_p2, %p47_p13 }
  0x13   : > { %338 = dma.hbm_to_vmem [thread:$0]  (!%p336_p11), %s126_s23, 32, %s128_s26, [#allocation6]  }
  0x14   : > { %p637_p3 = por %p48_p0, %p47_p13  ;;  %s35_s3 = ssub.s32 %s542_s13, %s729_s27 }
  0x15   : > { %p348_p7 = scmp.lt.s32.totalorder %s546_s14, 2  ;;  %p38_p10 = scmp.eq.s32.totalorder %s35_s3, 0 }
  0x16   : > { %s138_s4 = sand.u32 1, %s534_s11   ;;  %s318_s7 = sshll.u32 %s542_s13, 1 }
  0x17   : > { %s317_s5 = sshll.u32 %s138_s4, 1  ;;  %s148_s16 = scalar_lea.hbm %s713_s0, %s318_s7 }
  0x18   : > { %s652_s6 = scalar_select %p38_p10, %s534_s11, %s40_s28  }
  0x19   : > { %s142_s21 = scalar_lea.vmem [#allocation2], %s317_s5  ;;  %s150_s18 = sshll.u32 %s148_s16, 4  ;;  %s151_s18 = int_to_ptr.hbm [resolvable:$true] %s150_s18 }
  0x1a   : > { %s152_s22 = sshll.u32 %s142_s21, 4  ;;  %p340_p2 = pnand %p348_p7, %p637_p3  ;;  %s153_s22 = int_to_ptr.vmem [resolvable:$true] %s152_s22 }
  0x1b   : > { %s139_s23 = scalar_lea.sflag [#allocation3], %s138_s4  ;;  %161 = sbr.rel (%p621_p8) target bundleno = 50 (0x32), region = 28 }
  0x1c   : > { %342 = dma.hbm_to_vmem [thread:$0]  (!%p340_p2), %s151_s18, 32, %s153_s22, %s139_s23  }
  0x1d   : > { %s663_s25 = sand.u32 (!%p621_p8), 1, %s530_s10  }
  0x1e   : > { %s320_s26 = sshll.u32 (!%p621_p8), %s663_s25, 1  ;;  %s164_s28 = scalar_lea.sflag (!%p621_p8), [#allocation3], %s663_s25 }
  0x1f   : > { %s167_s3 = scalar_lea.vmem (!%p621_p8), [#allocation2], %s320_s26 }
  0x20   : > { %513 = dma.done.wait (%p608_p4), %s164_s28, 32  }
  0x21   : > { %515 = vsyncadd (%p608_p4), %s164_s28, 4294967264 }
  0x22   : > { %517 = dma.done.wait (%p598_p1), [#allocation6], 32  }
  0x23   : > { %519 = vsyncadd (%p598_p1), [#allocation6], 4294967264  ;;  %s324_s24 = sshll.u32 %s538_s12, 1  ;;  %v197_v0 = vlaneseq  ;;  %s193_s7 = scalar_lea.vmem [#allocation7], %s320_s26  ;;  %v194_v1 = vld [vmem:[%s167_s3] sm:$0x3] }
  0x24   : > { %s215_s5 = scalar_lea.hbm %s715_s2, %s324_s24  ;;  %s217_s8 = sshll.u32 %s193_s7, 4  ;;  %v195_v2 = vld [vmem:[#allocation5] sm:$0x3]  ;;  %s218_s8 = int_to_ptr.vmem [resolvable:$true] %s217_s8 }
  0x25   : > { %s219_s15 = sshll.u32 %s215_s5, 4  ;;  %vm199_vm0 = vcmp.lt.s32.totalorder %v197_v0, 256  ;;  %v196_v3 = vadd.f32 %v195_v2, %v194_v1  ;;  %s203_s17 = scalar_lea.sflag [#allocation4], %s663_s25  ;;  %s220_s15 = int_to_ptr.hbm [resolvable:$true] %s219_s15 }
  0x26   : > { %s474_s19 = sshra.s32 %s220_s15, 4  ;;  %s480_s22 = scalar_lea.hbm %s715_s2, 4  ;;  %s475_s19 = int_to_ptr.hbm [resolvable:$true] %s474_s19 }
  0x27   : > { %201 = vst.msk [vmem:[%s193_s7] sm:$0x3] %vm199_vm0, %v196_v3  ;;  %s476_s12 = scalar_lea.hbm %s475_s19, 2  ;;  %p481_p11 = scmp.lt.s32.totalorder %s475_s19, %s715_s2 }
  0x28   : > { %p477_p1 = scmp.ne.s32.totalorder %s475_s19, %s476_s12  ;;  %p482_p12 = scmp.lt.s32.totalorder %s480_s22, %s476_s12 }
  0x2a   : > { %p478_p4 = pnand %p477_p1, %p643_p5  ;;  %p483_p13 = por %p482_p12, %p481_p11 }
  0x2c   : > { %p479_p8 = pneg %p478_p4 }
  0x2e   : > { %p484_p0 = pnand %p483_p13, %p479_p8 }
  0x30   : > { %487 = shalt.err (!%p484_p0)
}
  0x31   : > { %333 = dma.vmem_to_hbm [thread:$0]  (%p643_p5), %s218_s8, 32, %s220_s15, %s203_s17  }
  0x32 PF: > { %s231_s25 = sand.u32 1, %s526_s9   ;;  %p344_p3 = pnand %p316_p9, %p613_p6 }
  0x33   : > { %s232_s26 = scalar_lea.sflag [#allocation4], %s231_s25 }
  0x34   : > { %p345_p7 = pneg %p344_p3 }
  0x36   : > { %521 = dma.done.wait (%p345_p7), %s232_s26, 32  }
  0x37   : > { %523 = vsyncadd (%p345_p7), %s232_s26, 4294967264  ;;  %s19_s14 = sadd.s32 1, %s546_s14   ;;  %s723_s9 = smov %s530_s10 }
  0x38   : > { %p16_p10 = scmp.ge.s32.totalorder %s19_s14, 4   ;;  %s724_s10 = smov %s534_s11 }
  0x39   : > { %s725_s11 = smov %s652_s6  ;;  %s726_s12 = smov %s542_s13 }
  0x3a   : > { %s727_s13 = smov %s729_s27  ;;  %18 = sbr.rel (!%p16_p10) target bundleno = 7 (0x7), region = 77 }
  0x3f   :  { %238 = vsyncpa [#allocation3], 1 }
  0x40   :  { %240 = vsyncpa [#allocation3 + $0x1], 1 }
  0x41   :  { %241 = vsyncpa [#allocation6], 1 }
  0x42   :  { %242 = vsyncpa [#allocation4], 1 }
  0x43   :  { %244 = vsyncpa [#allocation4 + $0x1], 1 }

</bundles_post_ra>
